<compile_context>
chip_gen: v5e
topology: v5e:2x2
jax: 0.10.0
libtpu: 0.0.40
codegen_flags: <defaults>
</compile_context>

<pallas_src>
import functools

import jax
import jax.numpy as jnp
from jax.experimental import pallas as pl
from jax.experimental.pallas import tpu as pltpu


def _layernorm_kernel(x_ref, g_ref, o_ref, *, eps):
    # x_ref: (1, C, St) tile; g_ref: (1, C, 1) gamma; o_ref: (1, C, St).
    x = x_ref[...].astype(jnp.float32)

    # Two-pass mean/variance (matches torch.var(dim=1, unbiased=False) exactly
    # and avoids the E[x^2] - mean^2 cancellation).  Reduction is over the
    # channel (sublane) axis -> XLU, per-lane result of shape (1, 1, St).
    mean = jnp.mean(x, axis=1, keepdims=True)
    centered = x - mean
    var = jnp.mean(centered * centered, axis=1, keepdims=True)
    inv = jax.lax.rsqrt(var + eps)                     # EUP slot, ~free

    gamma = g_ref[...].astype(jnp.float32)             # (1, C, 1)
    o_ref[...] = (centered * inv * gamma).astype(o_ref.dtype)


def _pick_lane_tile(S, C, itemsize, target_tile_bytes):
    """Largest lane tile (multiple of 128, or the full S) with one block <= target."""
    lanes = (target_tile_bytes // max(C * itemsize, 1)) // 128 * 128
    if lanes <= 0:
        lanes = 128
    if lanes >= S:
        return int(S)          # full-extent last dim: always a legal block shape
    return int(lanes)


def layernorm_pallas(x, gamma, eps=1e-5, target_tile_bytes=4 << 20):
    """x: (B, C, T, H, W); gamma: (1, C, 1, 1, 1). Matches the torch module's forward."""
    B, C, T, H, W = x.shape
    S = T * H * W
    x3 = x.reshape(B, C, S)                            # free reshape, no transpose
    g3 = gamma.reshape(1, C, 1).astype(x.dtype)

    st = _pick_lane_tile(S, C, x.dtype.itemsize, target_tile_bytes)
    num_s = pl.cdiv(S, st)                             # ragged tail is masked by Pallas

    out3 = pl.pallas_call(
        functools.partial(_layernorm_kernel, eps=eps),
        out_shape=jax.ShapeDtypeStruct((B, C, S), x.dtype),
        grid_spec=pltpu.PrefetchScalarGridSpec(
            num_scalar_prefetch=0,
            grid=(B, num_s),
            in_specs=[
                pl.BlockSpec((1, C, st), lambda b, s: (b, 0, s)),
                # Constant-index tiny block: DMA'd once, resident in VMEM.
                pl.BlockSpec((1, C, 1), lambda b, s: (0, 0, 0)),
            ],
            out_specs=pl.BlockSpec((1, C, st), lambda b, s: (b, 0, s)),
        ),
        compiler_params=pltpu.CompilerParams(
            # Every grid point is independent -> allow megacore sharding on
            # multi-TC parts (harmless no-op on single-TC v5e/v6e).
            dimension_semantics=("parallel", "parallel"),
            # Double-buffered input + output blocks (~4 * target_tile_bytes)
            # fit comfortably; stays under v7x's 64 MiB physical VMEM.
            vmem_limit_bytes=32 * 1024 * 1024,
        ),
    )(x3, g3)

    return out3.reshape(B, C, T, H, W)


def layernorm_reference(x, gamma, eps=1e-5):
    mean = jnp.mean(x, axis=1, keepdims=True)
    var = jnp.mean((x - mean) ** 2, axis=1, keepdims=True)
    return (x - mean) / jnp.sqrt(var + eps) * gamma


if __name__ == "__main__":
    B, C, T, H, W = 2, 4, 4, 8, 8
    key = jax.random.PRNGKey(0)
    x = jax.random.normal(key, (B, C, T, H, W), dtype=jnp.float32)

    # Deterministic parameter init, same as nn.Parameter(torch.ones(1, dim, 1, 1, 1)).
    gamma = jnp.ones((1, C, 1, 1, 1), dtype=jnp.float32)

    out = jax.block_until_ready(layernorm_pallas(x, gamma))
    ref = layernorm_reference(x, gamma)

    assert out.shape == (B, C, T, H, W)
    assert jnp.allclose(out, ref, atol=1e-5, rtol=1e-5)

    print("KERNEL_OK")
</pallas_src>

<mosaic_0001>
module attributes {stable_mosaic.version = 11 : i64} {
  func.func @_layernorm_kernel(%arg0: i32, %arg1: i32, %arg2: memref<1x4x256xf32, #tpu.memory_space<vmem>>, %arg3: memref<1x4x1xf32, #tpu.memory_space<vmem>>, %arg4: memref<1x4x256xf32, #tpu.memory_space<vmem>>) attributes {dimension_semantics = [#tpu.dimension_semantics<parallel>, #tpu.dimension_semantics<parallel>], iteration_bounds = array<i64: 2, 1>, scalar_prefetch = 0 : i64, scratch_operands = 0 : i64, tpu.core_type = #tpu.core_type<tc>, window_params = [{transform_indices = @transform_0, window_bounds = array<i64: 1, 4, 256>}, {pipeline_mode = #tpu.pipeline_mode<synchronous>, transform_indices = @transform_1, window_bounds = array<i64: 1, 4, 1>}, {transform_indices = @transform_2, window_bounds = array<i64: 1, 4, 256>}]} {
    %c0 = arith.constant 0 : index
    %c0_0 = arith.constant 0 : index
    %c0_1 = arith.constant 0 : index
    %0 = vector.load %arg2[%c0, %c0_0, %c0_1] : memref<1x4x256xf32, #tpu.memory_space<vmem>>, vector<1x4x256xf32>
    %cst = arith.constant dense<0.000000e+00> : vector<1x256xf32>
    %1 = vector.multi_reduction <add>, %0, %cst [1] : vector<1x4x256xf32> to vector<1x256xf32>
    %2 = vector.shape_cast %1 : vector<1x256xf32> to vector<1x1x256xf32>
    %cst_2 = arith.constant 4.000000e+00 : f32
    %3 = vector.broadcast %cst_2 : f32 to vector<1x1x256xf32>
    %4 = arith.divf %2, %3 : vector<1x1x256xf32>
    %5 = vector.broadcast %4 : vector<1x1x256xf32> to vector<1x4x256xf32>
    %6 = arith.subf %0, %5 : vector<1x4x256xf32>
    %7 = arith.mulf %6, %6 : vector<1x4x256xf32>
    %cst_3 = arith.constant dense<0.000000e+00> : vector<1x256xf32>
    %8 = vector.multi_reduction <add>, %7, %cst_3 [1] : vector<1x4x256xf32> to vector<1x256xf32>
    %9 = vector.shape_cast %8 : vector<1x256xf32> to vector<1x1x256xf32>
    %cst_4 = arith.constant 4.000000e+00 : f32
    %10 = vector.broadcast %cst_4 : f32 to vector<1x1x256xf32>
    %11 = arith.divf %9, %10 : vector<1x1x256xf32>
    %cst_5 = arith.constant 9.99999974E-6 : f32
    %12 = vector.broadcast %cst_5 : f32 to vector<1x1x256xf32>
    %13 = arith.addf %11, %12 : vector<1x1x256xf32>
    %14 = math.rsqrt %13 : vector<1x1x256xf32>
    %c0_6 = arith.constant 0 : index
    %c0_7 = arith.constant 0 : index
    %c0_8 = arith.constant 0 : index
    %15 = vector.load %arg3[%c0_6, %c0_7, %c0_8] : memref<1x4x1xf32, #tpu.memory_space<vmem>>, vector<1x4x1xf32>
    %16 = vector.broadcast %14 : vector<1x1x256xf32> to vector<1x4x256xf32>
    %17 = arith.mulf %6, %16 : vector<1x4x256xf32>
    %18 = vector.broadcast %15 : vector<1x4x1xf32> to vector<1x4x256xf32>
    %19 = arith.mulf %17, %18 : vector<1x4x256xf32>
    %c0_9 = arith.constant 0 : index
    %c0_10 = arith.constant 0 : index
    %c0_11 = arith.constant 0 : index
    %20 = vector.load %arg4[%c0_9, %c0_10, %c0_11] : memref<1x4x256xf32, #tpu.memory_space<vmem>>, vector<1x4x256xf32>
    tpu.vector_store %arg4[%c0_9, %c0_10, %c0_11], %19 {strides = array<i32>} : memref<1x4x256xf32, #tpu.memory_space<vmem>>, vector<1x4x256xf32>,
    return
  }
  func.func @transform_0(%arg0: i32, %arg1: i32) -> (i32, i32, i32) {
    %c0_i32 = arith.constant 0 : i32
    %c0_i32_0 = arith.constant 0 : i32
    return %arg0, %c0_i32, %arg1 : i32, i32, i32
  }
  func.func @transform_1(%arg0: i32, %arg1: i32) -> (i32, i32, i32) {
    %c0_i32 = arith.constant 0 : i32
    %c0_i32_0 = arith.constant 0 : i32
    %c0_i32_1 = arith.constant 0 : i32
    %c0_i32_2 = arith.constant 0 : i32
    return %c0_i32, %c0_i32_0, %c0_i32_1 : i32, i32, i32
  }
  func.func @transform_2(%arg0: i32, %arg1: i32) -> (i32, i32, i32) {
    %c0_i32 = arith.constant 0 : i32
    %c0_i32_0 = arith.constant 0 : i32
    return %arg0, %c0_i32, %arg1 : i32, i32, i32
  }
}

</mosaic_0001>

<bundles_post_ra>
// kernel: tpu_custom_call.1
= control target key start
LH: loop header
LB: loop body
LE: loop exit
PB: predicated region body
PF: predicated region fallthrough
CT: control target
= control target key end

     0   :  { %7 = vsyncpa [#allocation3], 0  ;;  %s739_s0 = inlined_call_operand.hbm [shape: f32[2,4,256], index: 0, kind: input, shape index: {}]   ;;  %s740_s1 = inlined_call_operand.vmem [shape: f32[1,4,1], index: 1, kind: input, shape index: {}]   ;;  %s741_s2 = inlined_call_operand.hbm [shape: f32[2,4,256], index: 2, kind: output, shape index: {}]  }
   0x1   :  { %9 = vsyncpa [#allocation3 + $0x1], 0 }
   0x2   :  { %10 = vsyncpa [#allocation4], 0 }
   0x3   :  { %12 = vsyncpa [#allocation4 + $0x1], 0  ;;  %s606_s9 = smov 0   ;;  %s608_s10 = smov 0  }
   0x4   :  { %s610_s11 = smov 0   ;;  %s612_s12 = smov 0  }
   0x5   :  { %s614_s13 = smov 0   ;;  %s616_s14 = smov 0  }
   0x6 LB: > { %s385_s15 = sadd.s32 4294967295, %s586_s14   ;;  %s386_s16 = sadd.s32 4294967294, %s586_s14   ;;  %s586_s14 = sphi %s616_s14, %s18_s14   ;;  %s582_s13 = sphi %s614_s13, %s750_s13   ;;  %s578_s12 = sphi %s612_s12, %s749_s12   ;;  %s574_s11 = sphi %s610_s11, %s748_s11   ;;  %s570_s10 = sphi %s608_s10, %s747_s10   ;;  %s566_s9 = sphi %s606_s9, %s746_s9  }
   0x7   : > { %s30_s17 = sadd.s32 1, %s582_s13  ;;  %s39_s18 = sadd.s32 1, %s574_s11 }
   0x8   : > { %p32_p0 = scmp.ge.s32.totalorder %s30_s17, 2  ;;  %p46_p1 = scmp.ne.s32.totalorder %s574_s11, %s570_s10 }
   0x9   : > { %p47_p2 = scmp.eq.s32.totalorder %s586_s14, 0  ;;  %p52_p3 = scmp.ne.s32.totalorder %s570_s10, %s566_s9 }
   0xa   : > { %s752_s17 = smov (%p32_p0, %s30_s17), 0  ;;  %p53_p5 = scmp.eq.s32.totalorder %s385_s15, 0 }
   0xb   : > { %p647_p4 = por %p47_p2, %p46_p1  ;;  %s34_s20 = ssub.s32 %s582_s13, %s752_s17 }
   0xc   : > { %p99_p6 = scmp.eq.s32.totalorder %s385_s15, 1  ;;  %p37_p7 = scmp.eq.s32.totalorder %s34_s20, 0 }
   0xd   : > { %p653_p8 = por %p53_p5, %p52_p3  ;;  %p105_p10 = scmp.eq.s32.totalorder %s386_s16, 1 }
   0xe   : > { %p657_p9 = por %p99_p6, %p46_p1  ;;  %p388_p12 = scmp.ge.s32.totalorder %s586_s14, 2 }
   0xf   : > { %s662_s23 = scalar_select %p37_p7, %s574_s11, %s39_s18  }
  0x10   : > { %p664_p11 = por %p105_p10, %p52_p3  ;;  %p414_p13 = scmp.lt.s32.totalorder %s586_s14, 2 }
  0x11   : > { %s128_s25 = sand.u32 1, %s574_s11   ;;  %s400_s27 = sshll.u32 %s582_s13, 3 }
  0x12   : > { %s389_s26 = sshll.u32 %s128_s25, 3  ;;  %s139_s30 = scalar_lea.hbm %s739_s0, %s400_s27 }
  0x13   : > { %s132_s3 = scalar_lea.vmem [#allocation2], %s389_s26  ;;  %s141_s5 = sshll.u32 %s139_s30, 4  ;;  %s142_s5 = int_to_ptr.hbm [resolvable:$true] %s141_s5 }
  0x14   : > { %s143_s4 = sshll.u32 %s132_s3, 4  ;;  %p407_p0 = pnand %p414_p13, %p647_p4  ;;  %s144_s4 = int_to_ptr.vmem [resolvable:$true] %s143_s4 }
  0x15   : > { %p392_p1 = scmp.ge.s32.totalorder %s586_s14, 1  ;;  %p148_p2 = scmp.lt.s32.totalorder %s586_s14, 3 }
  0x16   : > { %s129_s6 = scalar_lea.sflag [#allocation3], %s128_s25 }
  0x17   : > { %409 = dma.hbm_to_vmem [thread:$0]  (!%p407_p0), %s142_s5, 128, %s144_s4, %s129_s6  }
  0x18   : > { %p149_p3 = pnand %p392_p1, %p148_p2 }
  0x19   : > { %s680_s7 = sand.u32 (!%p149_p3), 1, %s570_s10  }
  0x1a   : > { %152 = sbr.rel (%p149_p3) target bundleno = 156 (0x9c), region = 28  ;;  %s393_s8 = sshll.u32 (!%p149_p3), %s680_s7, 3 }
  0x1b   : > { %s155_s15 = scalar_lea.sflag (!%p149_p3), [#allocation3], %s680_s7  ;;  %s158_s16 = scalar_lea.vmem (!%p149_p3), [#allocation2], %s393_s8 }
  0x1f   : > { %557 = dma.done.wait (%p653_p8), %s155_s15, 128  }
  0x20   : > { %559 = vsyncadd (%p653_p8), %s155_s15, 4294967168  ;;  %v588_v0 = vmov 0   ;;  %v264_v1 = vld [vmem:[%s740_s1] sm:$0xf]  ;;  %v589_v2 = vmov 4.0   ;;  %v182_v4 = vld [vmem:[%s158_s16] sm:$0xff] }
  0x21   : > { %467 = vset.pattern.permute.xlu0 %v588_v0  ;;  %468 = vrcp.f32 %v589_v2  ;;  %184 = vst [vmem:[#allocation1] ss:$2 sm:$0xff] %v182_v4  ;;  %vm189_vm0 = vcmask 1043456   ;;  %s401_s20 = sshll.u32 %s578_s12, 3  ;;  %s179_s27 = scalar_lea.vmem [#allocation5], %s393_s8 }
  0x22   : > { %273 = vperm.xlu0 %467, %v264_v1   ;;  %s296_s26 = scalar_lea.hbm %s741_s2, %s401_s20  ;;  %s298_s28 = sshll.u32 %s179_s27, 4  ;;  %s299_s28 = int_to_ptr.vmem [resolvable:$true] %s298_s28 }
  0x23   : > { %s300_s29 = sshll.u32 %s296_s26, 4  ;;  %s283_s30 = scalar_lea.sflag [#allocation4], %s680_s7  ;;  %s301_s29 = int_to_ptr.hbm [resolvable:$true] %s300_s29 }
  0x24   : > { %s518_s3 = sshra.s32 %s301_s29, 4  ;;  %s524_s6 = scalar_lea.hbm %s741_s2, 16  ;;  %s519_s3 = int_to_ptr.hbm [resolvable:$true] %s518_s3 }
  0x25   : > { %s520_s12 = scalar_lea.hbm %s519_s3, 8  ;;  %p525_p7 = scmp.lt.s32.totalorder %s519_s3, %s741_s2 }
  0x26   : > { %p521_p4 = scmp.ne.s32.totalorder %s519_s3, %s520_s12  ;;  %p526_p8 = scmp.lt.s32.totalorder %s524_s6, %s520_s12 }
  0x27   : > { %v469_v3 = vpop.eup %468 }
  0x28   : > { %v205_v5 = vmul.f32 4.0, %v469_v3  ;;  %v186_v7 = vld.sshfl [vmem:[#allocation1 + $0x8] sm:$0xff pattern:$0x75316420]  ;;  %vm209_vm1 = vweird.f32 %v469_v3  ;;  %p522_p5 = pnand %p521_p4, %p657_p9  ;;  %p527_p10 = por %p526_p8, %p525_p7 }
  0x29   : > { %v197_v8 = vsel %vm189_vm0, %v186_v7, 0.0  ;;  %v185_v9 = vld.sshfl [vmem:[#allocation1] sm:$0xff pattern:$0x75316420] }
  0x2a   : > { %v206_v6 = vsub.f32 1.0, %v205_v5  ;;  %v198_v10 = vrot.slane %v197_v8, 4  ;;  %v190_v12 = vsel %vm189_vm0, %v185_v9, 0.0  ;;  %v590_v5 = vmov 839922192   ;;  %p523_p6 = pneg %p522_p5 }
  0x2b   : > { %v191_v13 = vrot.slane %v190_v12, 4 }
  0x2c   : > { %v207_v11 = vmul.f32 %v469_v3, %v206_v6  ;;  %v199_v14 = vadd.f32 %v198_v10, %v197_v8  ;;  %v276_v6 = vunpack.c.l.s4 %v590_v5  ;;  %p528_p13 = pnand %p527_p10, %p523_p6 }
  0x2d   : > { %v192_v15 = vadd.f32 %v191_v13, %v190_v12 }
  0x2e   : > { %v200_v16 = vrot.slane %v199_v14, 2  ;;  %v208_v17 = vadd.f32 %v469_v3, %v207_v11  ;;  %v277_v7 = vunpack.c.0.s8 %v276_v6 }
  0x2f   : > { %v193_v18 = vrot.slane %v192_v15, 2 }
  0x30   : > { %v201_v19 = vadd.f32 %v200_v16, %v199_v14  ;;  %v210_v22 = vsel %vm209_vm1, %v469_v3, %v208_v17 }
  0x31   : > { %v194_v20 = vadd.f32 %v193_v18, %v192_v15 }
  0x32   : > { %v202_v21 = vrot.slane %v201_v19, 1 }
  0x33   : > { %v195_v23 = vrot.slane %v194_v20, 1 }
  0x34   : > { %v203_v24 = vadd.f32 %v202_v21, %v201_v19 }
  0x35   : > { %v196_v25 = vadd.f32 %v195_v23, %v194_v20 }
  0x36   : > { %v212_v26 = vmul.f32 %v210_v22, %v203_v24 }
  0x37   : > { %v211_v27 = vmul.f32 %v210_v22, %v196_v25 }
  0x38   : > { %v215_v28 = vrot.slane %v212_v26, 4 }
  0x3a   : > { %v216_v29 = vsel %vm189_vm0, %v211_v27, %v215_v28 }
  0x3b   : > { %v218_v30 = vsub.f32 %v182_v4, %v216_v29 }
  0x3d   : > { %v219_v31 = vmul.f32 %v218_v30, %v218_v30 }
  0x3f   : > { %221 = vst [vmem:[#allocation1] ss:$2 sm:$0xff] %v219_v31 }
  0x46   : > { %v223_v32 = vld.sshfl [vmem:[#allocation1 + $0x8] sm:$0xff pattern:$0x75316420]  ;;  %v222_v34 = vld.sshfl [vmem:[#allocation1] sm:$0xff pattern:$0x75316420] }
  0x47   : > { %v233_v33 = vsel %vm189_vm0, %v223_v32, 0.0  ;;  %v226_v36 = vsel %vm189_vm0, %v222_v34, 0.0 }
  0x48   : > { %v234_v35 = vrot.slane %v233_v33, 4  ;;  %v227_v37 = vrot.slane %v226_v36, 4 }
  0x4a   : > { %v235_v38 = vadd.f32 %v234_v35, %v233_v33  ;;  %v228_v39 = vadd.f32 %v227_v37, %v226_v36 }
  0x4c   : > { %v236_v40 = vrot.slane %v235_v38, 2  ;;  %v229_v41 = vrot.slane %v228_v39, 2 }
  0x4e   : > { %v237_v42 = vadd.f32 %v236_v40, %v235_v38  ;;  %v230_v43 = vadd.f32 %v229_v41, %v228_v39 }
  0x50   : > { %v238_v44 = vrot.slane %v237_v42, 1  ;;  %v231_v45 = vrot.slane %v230_v43, 1 }
  0x52   : > { %v239_v46 = vadd.f32 %v238_v44, %v237_v42  ;;  %v232_v47 = vadd.f32 %v231_v45, %v230_v43 }
  0x54   : > { %v241_v48 = vmul.f32 %v239_v46, %v210_v22  ;;  %v240_v49 = vmul.f32 %v232_v47, %v210_v22 }
  0x56   : > { %v243_v50 = vadd.f32 1e-05, %v241_v48  ;;  %v242_v51 = vadd.f32 1e-05, %v240_v49 }
  0x58   : > { %470 = vrsqrt.f32 %v243_v50  ;;  %vm260_vm2 = vweird.f32 %v243_v50  ;;  %vm250_vm5 = vweird.f32 %v242_v51 }
  0x59   : > { %472 = vrsqrt.f32 %v242_v51 }
  0x5e   : > { %v471_v52 = vpop.eup %470 }
  0x5f   : > { %v255_v53 = vmul.f32 %v471_v52, %v243_v50  ;;  %v473_v54 = vpop.eup %472  ;;  %vm261_vm3 = vweird.f32 %v471_v52 }
  0x60   : > { %v245_v55 = vmul.f32 %v473_v54, %v242_v51  ;;  %vm262_vm4 = vmor %vm260_vm2, %vm261_vm3  ;;  %vm251_vm6 = vweird.f32 %v473_v54 }
  0x61   : > { %v256_v56 = vmul.f32 %v471_v52, %v255_v53  ;;  %vm252_vm7 = vmor %vm250_vm5, %vm251_vm6 }
  0x62   : > { %v246_v57 = vmul.f32 %v473_v54, %v245_v55 }
  0x63   : > { %v257_v58 = vmul.f32 0.5, %v256_v56 }
  0x64   : > { %v247_v59 = vmul.f32 0.5, %v246_v57 }
  0x65   : > { %v258_v60 = vsub.f32 1.5, %v257_v58 }
  0x66   : > { %v248_v61 = vsub.f32 1.5, %v247_v59 }
  0x67   : > { %v259_v62 = vmul.f32 %v471_v52, %v258_v60 }
  0x68   : > { %v249_v63 = vmul.f32 %v473_v54, %v248_v61 }
  0x69   : > { %v263_v0 = vsel %vm262_vm4, %v471_v52, %v259_v62 }
  0x6a   : > { %v267_v1 = vrot.slane %v263_v0, 4  ;;  %v253_v2 = vsel %vm252_vm7, %v473_v54, %v249_v63 }
  0x6c   : > { %v268_v3 = vsel %vm189_vm0, %v253_v2, %v267_v1 }
  0x6d   : > { %v270_v4 = vmul.f32 %v268_v3, %v218_v30 }
  0x94   : > { %v274_v8 = vpop.permute.xlu0 %273 }
  0x95   : > { %v278_v9 = vperm.slane %v274_v8, %v277_v7 }
  0x97   : > { %v280_v10 = vmul.f32 %v278_v9, %v270_v4 }
  0x99   : > { %281 = vst [vmem:[%s179_s27] sm:$0xff] %v280_v10 }
  0x9a   : > { %531 = shalt.err (!%p528_p13)
}
  0x9b   : > { %404 = dma.vmem_to_hbm [thread:$0]  (%p657_p9), %s299_s28, 128, %s301_s29, %s283_s30  }
  0x9c PF: > { %s312_s7 = sand.u32 1, %s566_s9   ;;  %p411_p0 = pnand %p388_p12, %p664_p11 }
  0x9d   : > { %s313_s16 = scalar_lea.sflag [#allocation4], %s312_s7 }
  0x9e   : > { %p412_p1 = pneg %p411_p0 }
  0xa0   : > { %561 = dma.done.wait (%p412_p1), %s313_s16, 128  }
  0xa1   : > { %563 = vsyncadd (%p412_p1), %s313_s16, 4294967168  ;;  %s18_s14 = sadd.s32 1, %s586_s14   ;;  %s746_s9 = smov %s570_s10 }
  0xa2   : > { %p15_p2 = scmp.ge.s32.totalorder %s18_s14, 4   ;;  %s747_s10 = smov %s574_s11 }
  0xa3   : > { %s748_s11 = smov %s662_s23  ;;  %s749_s12 = smov %s582_s13 }
  0xa4   : > { %s750_s13 = smov %s752_s17  ;;  %17 = sbr.rel (!%p15_p2) target bundleno = 6 (0x6), region = 73 }
  0xa9   :  { %319 = vsyncpa [#allocation3], 1 }
  0xaa   :  { %321 = vsyncpa [#allocation3 + $0x1], 1 }
  0xab   :  { %322 = vsyncpa [#allocation4], 1 }
  0xac   :  { %324 = vsyncpa [#allocation4 + $0x1], 1 }

</bundles_post_ra>
